<compile_context>
chip_gen: v6e
topology: v6e:2x2x1
jax: 0.10.0
libtpu: 0.0.40
codegen_flags: <defaults>
</compile_context>

<pallas_src>
import functools

import jax
import jax.numpy as jnp
from jax.experimental import pallas as pl
from jax.experimental.pallas import tpu as pltpu


def _round_up(x, m):
    return ((x + m - 1) // m) * m


# --------------------------------------------------------------------------- #
# Kernel body
# --------------------------------------------------------------------------- #
def _ffn_kernel(x_ref, w1_ref, b1_ref, w2_ref, b2_ref, o_ref, *scratch, tff):
    """One (row-tile i, d_ff-tile k) step of  relu(x@w1+b1) @ w2 + b2."""
    # When no scratch is passed the (f32) output tile itself is the
    # accumulator: its block index is constant across k, so it stays resident.
    acc_ref = scratch[0] if scratch else o_ref
    k = pl.program_id(1)

    @pl.when(k == 0)
    def _():
        acc_ref[...] = jnp.zeros_like(acc_ref)

    # (tn, dm) @ (dm, tff) -> f32 (tn, tff) on the MXU.
    h = jnp.dot(x_ref[...], w1_ref[...], preferred_element_type=jnp.float32)
    # b1 is fully resident; slice the current d_ff tile (no per-step DMA).
    b1 = b1_ref[:, pl.ds(pl.multiple_of(k * tff, 128), tff)]
    h = jnp.maximum(h + b1, 0.0)                       # bias + ReLU (VPU)
    # dropout == identity (eval mode)

    # Accumulate (tn, tff) @ (tff, dm) into the f32 accumulator.  h is downcast
    # to the weight dtype (standard mixed precision, f32 accumulation).
    acc_ref[...] += jnp.dot(h.astype(w2_ref.dtype), w2_ref[...],
                            preferred_element_type=jnp.float32)

    @pl.when(k == pl.num_programs(1) - 1)
    def _():
        o_ref[...] = (acc_ref[...] + b2_ref[...]).astype(o_ref.dtype)


# --------------------------------------------------------------------------- #
# Tile / VMEM planning
# --------------------------------------------------------------------------- #
def _vmem_bytes(tn, tff, dm_pad, dff_pad, w_bytes, x_bytes, out_bytes,
                use_scratch):
    est = 2 * tn * dm_pad * x_bytes            # x tile (double-buffered)
    est += 2 * dm_pad * tff * w_bytes          # w1 tile
    est += 2 * tff * dm_pad * w_bytes          # w2 tile
    est += 2 * 8 * dff_pad * 4                 # b1 (resident, sublane-padded)
    est += 2 * 8 * dm_pad * 4                  # b2 (resident)
    est += 2 * tn * dm_pad * out_bytes         # out tile
    if use_scratch:
        est += tn * dm_pad * 4                 # f32 accumulator scratch
    est += tn * tff * 4 + tn * tff * w_bytes   # h (f32) + its downcast copy
    return est


def _choose_tiles(n8, dm_pad, dff_pad, w_bytes, x_bytes, out_bytes,
                  use_scratch, tile_n, tile_ff):
    """Pick (tn, tff, vmem_limit) adapted to this chip's VMEM capacity."""
    try:
        vmem_cap = pltpu.get_tpu_info().vmem_capacity_bytes
    except Exception:                          # pragma: no cover
        vmem_cap = 64 << 20                    # conservative (v7x-sized)
    small_vmem = vmem_cap < (100 << 20)        # v7x: 64 MiB/TC, 2 TCs/chip
    budget = vmem_cap * 3 // 4                 # headroom for compiler scratch

    def est(tn, tff):
        return _vmem_bytes(tn, tff, dm_pad, dff_pad, w_bytes, x_bytes,
                           out_bytes, use_scratch)

    # ---- row-tile candidates (descending) -------------------------------- #
    tn_target = 512 if small_vmem else 1024    # per-generation default
    tn_max = _round_up(min(tile_n if tile_n is not None else tn_target, n8), 8)
    if tile_n is None and small_vmem and n8 > 8:
        # v7x megacore: keep >= 2 row tiles so both TensorCores get work.
        tn_max = min(tn_max, _round_up((n8 + 1) // 2, 8))
    tn_max = max(tn_max, 8)
    tn_cands = []
    t = tn_max
    while True:
        tn_cands.append(t)
        if t <= 8:
            break
        t = max(8, _round_up(t // 2, 8))

    def fit_tff(v):
        v = max(128, min(_round_up(v, 128), dff_pad))
        while dff_pad % v:
            v -= 128
        return v

    if tile_n is not None and tile_ff is not None:
        tn, tff = tn_cands[0], fit_tff(tile_ff)
    else:
        tff_req = fit_tff(tile_ff) if tile_ff is not None else None
        tn, tff, found = tn_cands[-1], 128, False
        if tff_req is None:
            # 1) fully resident weights: k grid == 1, weights DMA'd once.
            for cand in tn_cands:
                if est(cand, dff_pad) <= budget:
                    tn, tff, found = cand, dff_pad, True
                    break
        if not found:
            # 2) streamed weights with a per-generation d_ff tile.
            stream_tff = tff_req if tff_req is not None else \
                fit_tff(256 if small_vmem else 512)
            for cand in tn_cands:
                if est(cand, stream_tff) <= budget:
                    tn, tff, found = cand, stream_tff, True
                    break
            if not found:
                tn, tff = tn_cands[-1], 128

    vmem_limit = int(min(vmem_cap * 13 // 16,
                         max(est(tn, tff) + (8 << 20), 32 << 20)))
    return tn, tff, vmem_limit


# --------------------------------------------------------------------------- #
# Public API
# --------------------------------------------------------------------------- #
def pad_params(w1, b1, w2, b2, *, compute_dtype=jnp.bfloat16):
    """One-time parameter prep (do this OUTSIDE the per-step forward).

    Lane-aligns (pads to multiples of 128) and casts weights to the compute
    dtype (biases stay f32).  Weights are stored (in_features, out_features),
    i.e. PyTorch weight.T.  Zero padding is semantics-preserving: padded d_ff
    columns give relu(x@0 + 0) = 0, which multiplies zero rows of w2; padded
    d_model rows/cols only touch output columns the wrapper slices off.
    """
    d_model, d_ff = w1.shape
    dm_pad = _round_up(d_model, 128)
    dff_pad = _round_up(d_ff, 128)
    w1p = jnp.pad(w1, ((0, dm_pad - d_model), (0, dff_pad - d_ff)))
    w2p = jnp.pad(w2, ((0, dff_pad - d_ff), (0, dm_pad - d_model)))
    b1p = jnp.pad(b1, (0, dff_pad - d_ff)).reshape(1, dff_pad)
    b2p = jnp.pad(b2, (0, dm_pad - d_model)).reshape(1, dm_pad)
    return (w1p.astype(compute_dtype), b1p.astype(jnp.float32),
            w2p.astype(compute_dtype), b2p.astype(jnp.float32))


@functools.partial(jax.jit, static_argnames=("tile_n", "tile_ff"))
def feed_forward(x, w1p, b1p, w2p, b2p, *, tile_n=None, tile_ff=None):
    """Fused FFN forward: relu(x @ w1 + b1) @ w2 + b2  (dropout = identity).

    x: (batch, seq, d_model).  Parameters must come from pad_params().
    Output dtype == x.dtype; accumulation is always f32.
    """
    batch, seq, d_model = x.shape
    dm_pad, dff_pad = w1p.shape
    assert w2p.shape == (dff_pad, dm_pad)
    assert dm_pad % 128 == 0 and dff_pad % 128 == 0 and dm_pad >= d_model

    n = batch * seq
    out_dtype = x.dtype
    use_scratch = out_dtype != jnp.float32     # else accumulate into o_ref

    x2d = x.reshape(n, d_model).astype(w1p.dtype)   # bf16 compute by default

    w_bytes = jnp.dtype(w1p.dtype).itemsize
    out_bytes = jnp.dtype(out_dtype).itemsize
    n8 = _round_up(n, 8)

    tn, tff, vmem_limit = _choose_tiles(
        n8, dm_pad, dff_pad, w_bytes, w_bytes, out_bytes, use_scratch,
        tile_n, tile_ff)

    n_pad = _round_up(n, tn)
    if n_pad != n or dm_pad != d_model:
        x2d = jnp.pad(x2d, ((0, n_pad - n), (0, dm_pad - d_model)))

    grid = (n_pad // tn, dff_pad // tff)
    scratch_shapes = ([pltpu.VMEM((tn, dm_pad), jnp.float32)]
                      if use_scratch else [])

    cost = pl.CostEstimate(
        flops=4 * n_pad * dm_pad * dff_pad,     # two matmuls, 2 flops per MAC
        transcendentals=0,
        bytes_accessed=(x2d.size * w_bytes + w1p.size * w_bytes
                        + w2p.size * w_bytes + b1p.size * 4 + b2p.size * 4
                        + n_pad * dm_pad * out_bytes),
    )

    out2d = pl.pallas_call(
        functools.partial(_ffn_kernel, tff=tff),
        out_shape=jax.ShapeDtypeStruct((n_pad, dm_pad), out_dtype),
        grid_spec=pltpu.PrefetchScalarGridSpec(
            num_scalar_prefetch=0,
            grid=grid,
            in_specs=[
                pl.BlockSpec((tn, dm_pad), lambda i, k: (i, 0)),     # x
                pl.BlockSpec((dm_pad, tff), lambda i, k: (0, k)),    # w1
                pl.BlockSpec((1, dff_pad), lambda i, k: (0, 0)),     # b1 (res.)
                pl.BlockSpec((tff, dm_pad), lambda i, k: (k, 0)),    # w2
                pl.BlockSpec((1, dm_pad), lambda i, k: (0, 0)),      # b2 (res.)
            ],
            out_specs=pl.BlockSpec((tn, dm_pad), lambda i, k: (i, 0)),
            scratch_shapes=scratch_shapes,
        ),
        compiler_params=pltpu.CompilerParams(
            dimension_semantics=("parallel", "arbitrary"),
            vmem_limit_bytes=vmem_limit,
        ),
        cost_estimate=cost,
    )(x2d, w1p, b1p, w2p, b2p)

    return out2d[:n, :d_model].reshape(batch, seq, d_model)


# --------------------------------------------------------------------------- #
# Reference / init helpers
# --------------------------------------------------------------------------- #
def init_params(key, d_model, d_ff, dtype=jnp.float32):
    """Deterministic init mimicking nn.Linear (uniform +/- 1/sqrt(fan_in))."""
    k1, k2, k3, k4 = jax.random.split(key, 4)
    bound1 = 1.0 / (d_model ** 0.5)
    bound2 = 1.0 / (d_ff ** 0.5)
    # stored as (in_features, out_features) == PyTorch weight.T
    w1 = jax.random.uniform(k1, (d_model, d_ff), dtype, -bound1, bound1)
    b1 = jax.random.uniform(k2, (d_ff,), dtype, -bound1, bound1)
    w2 = jax.random.uniform(k3, (d_ff, d_model), dtype, -bound2, bound2)
    b2 = jax.random.uniform(k4, (d_model,), dtype, -bound2, bound2)
    return w1, b1, w2, b2


def _ref_ffn(x, w1, b1, w2, b2, compute_dtype=None):
    """Pure-JAX reference mirroring the kernel's mixed-precision recipe."""
    cd = compute_dtype if compute_dtype is not None else x.dtype
    xb, w1b, w2b = x.astype(cd), w1.astype(cd), w2.astype(cd)
    h = jnp.dot(xb, w1b, preferred_element_type=jnp.float32) + b1
    h = jnp.maximum(h, 0.0).astype(cd)
    o = jnp.dot(h, w2b, preferred_element_type=jnp.float32) + b2
    return o.astype(x.dtype)


if __name__ == "__main__":
    key = jax.random.PRNGKey(0)
    kx, kp, kx2, kp2 = jax.random.split(key, 4)

    # --- small case matching the module's toy sizes ----------------------- #
    batch, seq, d_model, d_ff = 2, 8, 32, 64
    x = jax.random.normal(kx, (batch, seq, d_model), dtype=jnp.float32)
    w1, b1, w2, b2 = init_params(kp, d_model, d_ff)

    # Default path: bf16 compute, f32 accumulation, f32 output.
    params_bf16 = pad_params(w1, b1, w2, b2)            # once, outside the step
    out = jax.block_until_ready(feed_forward(x, *params_bf16))
    ref_bf16 = _ref_ffn(x, w1, b1, w2, b2, compute_dtype=jnp.bfloat16)
    assert out.shape == (batch, seq, d_model)
    assert jnp.allclose(out, ref_bf16, atol=2e-2, rtol=2e-2)

    # Exact-f32 compute path.
    params_f32 = pad_params(w1, b1, w2, b2, compute_dtype=jnp.float32)
    out_f32 = jax.block_until_ready(feed_forward(x, *params_f32))
    ref_f32 = _ref_ffn(x, w1, b1, w2, b2)
    assert jnp.allclose(out_f32, ref_f32, atol=1e-4, rtol=1e-4)

    # bf16 activations (exercises the f32 scratch-accumulator path).
    out_bf = jax.block_until_ready(
        feed_forward(x.astype(jnp.bfloat16), *params_bf16))
    assert out_bf.dtype == jnp.bfloat16
    assert jnp.allclose(out_bf.astype(jnp.float32), ref_bf16,
                        atol=6e-2, rtol=6e-2)

    # --- larger case: multi-tile grid + forced d_ff reduction loop -------- #
    b2_, s2_, dm2_, dff2_ = 2, 128, 256, 1024
    x2 = jax.random.normal(kx2, (b2_, s2_, dm2_), dtype=jnp.float32)
    p2 = init_params(kp2, dm2_, dff2_)
    p2_pad = pad_params(*p2)
    out2 = jax.block_until_ready(feed_forward(x2, *p2_pad))   # auto (resident)
    out2s = jax.block_until_ready(                            # streamed k-loop
        feed_forward(x2, *p2_pad, tile_n=128, tile_ff=256))
    ref2 = _ref_ffn(x2, *p2, compute_dtype=jnp.bfloat16)
    assert out2.shape == (b2_, s2_, dm2_)
    assert jnp.allclose(out2, ref2, atol=2e-2, rtol=2e-2)
    assert jnp.allclose(out2s, ref2, atol=2e-2, rtol=2e-2)

    print("KERNEL_OK")
</pallas_src>

<mosaic_0001>
module attributes {stable_mosaic.version = 11 : i64} {
  func.func @_ffn_kernel(%arg0: i32, %arg1: i32, %arg2: memref<8x128xbf16, #tpu.memory_space<vmem>>, %arg3: memref<128x128xbf16, #tpu.memory_space<vmem>>, %arg4: memref<1x128xf32, #tpu.memory_space<vmem>>, %arg5: memref<128x128xbf16, #tpu.memory_space<vmem>>, %arg6: memref<1x128xf32, #tpu.memory_space<vmem>>, %arg7: memref<8x128xf32, #tpu.memory_space<vmem>>) attributes {dimension_semantics = [#tpu.dimension_semantics<parallel>, #tpu.dimension_semantics<arbitrary>], iteration_bounds = array<i64: 2, 1>, scalar_prefetch = 0 : i64, scratch_operands = 0 : i64, tpu.core_type = #tpu.core_type<tc>, window_params = [{transform_indices = @transform_0, window_bounds = array<i64: 8, 128>}, {transform_indices = @transform_1, window_bounds = array<i64: 128, 128>}, {pipeline_mode = #tpu.pipeline_mode<synchronous>, transform_indices = @transform_2, window_bounds = array<i64: 1, 128>}, {transform_indices = @transform_3, window_bounds = array<i64: 128, 128>}, {pipeline_mode = #tpu.pipeline_mode<synchronous>, transform_indices = @transform_4, window_bounds = array<i64: 1, 128>}, {transform_indices = @transform_5, window_bounds = array<i64: 8, 128>}]} {
    %c0_i32 = arith.constant 0 : i32
    %0 = arith.cmpi eq, %arg1, %c0_i32 : i32
    %1 = arith.extui %0 : i1 to i32
    %c0_i32_0 = arith.constant 0 : i32
    %2 = arith.cmpi ne, %1, %c0_i32_0 : i32
    scf.if %2 {
      %cst_15 = arith.constant 0.000000e+00 : f32
      %23 = vector.broadcast %cst_15 : f32 to vector<8x128xf32>
      %c0_16 = arith.constant 0 : index
      %c0_17 = arith.constant 0 : index
      %24 = vector.load %arg7[%c0_16, %c0_17] : memref<8x128xf32, #tpu.memory_space<vmem>>, vector<8x128xf32>
      tpu.vector_store %arg7[%c0_16, %c0_17], %23 {strides = array<i32>} : memref<8x128xf32, #tpu.memory_space<vmem>>, vector<8x128xf32>,
    } else {
    }
    %c0 = arith.constant 0 : index
    %c0_1 = arith.constant 0 : index
    %3 = vector.load %arg2[%c0, %c0_1] : memref<8x128xbf16, #tpu.memory_space<vmem>>, vector<8x128xbf16>
    %c0_2 = arith.constant 0 : index
    %c0_3 = arith.constant 0 : index
    %4 = vector.load %arg3[%c0_2, %c0_3] : memref<128x128xbf16, #tpu.memory_space<vmem>>, vector<128x128xbf16>
    %cst = arith.constant dense<0.000000e+00> : vector<8x128xf32>
    %5 = tpu.matmul %3, %4, %cst {dimension_numbers = #tpu.dot_dimension_numbers<[1], [0], [0], [1], [0, 0, 1, 1], [], []>} : vector<8x128xbf16>, vector<128x128xbf16>, vector<8x128xf32> -> vector<8x128xf32>
    %c128_i32 = arith.constant 128 : i32
    %6 = arith.muli %arg1, %c128_i32 : i32
    %7 = tpu.assume_multiple %6, 128 : i32
    %c0_4 = arith.constant 0 : index
    %8 = arith.index_cast %7 : i32 to index
    %9 = vector.load %arg4[%c0_4, %8] : memref<1x128xf32, #tpu.memory_space<vmem>>, vector<1x128xf32>
    %10 = vector.broadcast %9 : vector<1x128xf32> to vector<8x128xf32>
    %11 = arith.addf %5, %10 : vector<8x128xf32>
    %cst_5 = arith.constant 0.000000e+00 : f32
    %12 = vector.broadcast %cst_5 : f32 to vector<8x128xf32>
    %13 = arith.maximumf %11, %12 : vector<8x128xf32>
    %c0_6 = arith.constant 0 : index
    %c0_7 = arith.constant 0 : index
    %14 = vector.load %arg7[%c0_6, %c0_7] : memref<8x128xf32, #tpu.memory_space<vmem>>, vector<8x128xf32>
    %15 = arith.truncf %13 : vector<8x128xf32> to vector<8x128xbf16>
    %c0_8 = arith.constant 0 : index
    %c0_9 = arith.constant 0 : index
    %16 = vector.load %arg5[%c0_8, %c0_9] : memref<128x128xbf16, #tpu.memory_space<vmem>>, vector<128x128xbf16>
    %cst_10 = arith.constant dense<0.000000e+00> : vector<8x128xf32>
    %17 = tpu.matmul %15, %16, %cst_10 {dimension_numbers = #tpu.dot_dimension_numbers<[1], [0], [0], [1], [0, 0, 1, 1], [], []>} : vector<8x128xbf16>, vector<128x128xbf16>, vector<8x128xf32> -> vector<8x128xf32>
    %18 = arith.addf %14, %17 : vector<8x128xf32>
    %c0_11 = arith.constant 0 : index
    %c0_12 = arith.constant 0 : index
    %19 = vector.load %arg7[%c0_11, %c0_12] : memref<8x128xf32, #tpu.memory_space<vmem>>, vector<8x128xf32>
    tpu.vector_store %arg7[%c0_11, %c0_12], %18 {strides = array<i32>} : memref<8x128xf32, #tpu.memory_space<vmem>>, vector<8x128xf32>,
    %c0_i32_13 = arith.constant 0 : i32
    %20 = arith.cmpi eq, %arg1, %c0_i32_13 : i32
    %21 = arith.extui %20 : i1 to i32
    %c0_i32_14 = arith.constant 0 : i32
    %22 = arith.cmpi ne, %21, %c0_i32_14 : i32
    scf.if %22 {
      %c0_15 = arith.constant 0 : index
      %c0_16 = arith.constant 0 : index
      %23 = vector.load %arg7[%c0_15, %c0_16] : memref<8x128xf32, #tpu.memory_space<vmem>>, vector<8x128xf32>
      %c0_17 = arith.constant 0 : index
      %c0_18 = arith.constant 0 : index
      %24 = vector.load %arg6[%c0_17, %c0_18] : memref<1x128xf32, #tpu.memory_space<vmem>>, vector<1x128xf32>
      %25 = vector.broadcast %24 : vector<1x128xf32> to vector<8x128xf32>
      %26 = arith.addf %23, %25 : vector<8x128xf32>
      %c0_19 = arith.constant 0 : index
      %c0_20 = arith.constant 0 : index
      %27 = vector.load %arg7[%c0_19, %c0_20] : memref<8x128xf32, #tpu.memory_space<vmem>>, vector<8x128xf32>
      tpu.vector_store %arg7[%c0_19, %c0_20], %26 {strides = array<i32>} : memref<8x128xf32, #tpu.memory_space<vmem>>, vector<8x128xf32>,
    } else {
    }
    return
  }
  func.func @transform_0(%arg0: i32, %arg1: i32) -> (i32, i32) {
    %c0_i32 = arith.constant 0 : i32
    %c0_i32_0 = arith.constant 0 : i32
    return %arg0, %c0_i32 : i32, i32
  }
  func.func @transform_1(%arg0: i32, %arg1: i32) -> (i32, i32) {
    %c0_i32 = arith.constant 0 : i32
    %c0_i32_0 = arith.constant 0 : i32
    return %c0_i32, %arg1 : i32, i32
  }
  func.func @transform_2(%arg0: i32, %arg1: i32) -> (i32, i32) {
    %c0_i32 = arith.constant 0 : i32
    %c0_i32_0 = arith.constant 0 : i32
    %c0_i32_1 = arith.constant 0 : i32
    return %c0_i32, %c0_i32_0 : i32, i32
  }
  func.func @transform_3(%arg0: i32, %arg1: i32) -> (i32, i32) {
    %c0_i32 = arith.constant 0 : i32
    %c0_i32_0 = arith.constant 0 : i32
    return %arg1, %c0_i32 : i32, i32
  }
  func.func @transform_4(%arg0: i32, %arg1: i32) -> (i32, i32) {
    %c0_i32 = arith.constant 0 : i32
    %c0_i32_0 = arith.constant 0 : i32
    %c0_i32_1 = arith.constant 0 : i32
    return %c0_i32, %c0_i32_0 : i32, i32
  }
  func.func @transform_5(%arg0: i32, %arg1: i32) -> (i32, i32) {
    %c0_i32 = arith.constant 0 : i32
    %c0_i32_0 = arith.constant 0 : i32
    return %arg0, %c0_i32 : i32, i32
  }
}

</mosaic_0001>

<bundles_post_ra>
// kernel: feed_forward.1
= control target key start
LH: loop header
LB: loop body
LE: loop exit
PB: predicated region body
PF: predicated region fallthrough
CT: control target
= control target key end

     0   :  { %10 = vsyncpa [#allocation3], 0  ;;  %s977_s0 = inlined_call_operand.vmem [shape: bf16[16,128], index: 0, kind: input, shape index: {}]   ;;  %s978_s1 = inlined_call_operand.hbm [shape: bf16[128,128], index: 1, kind: input, shape index: {}]   ;;  %s979_s2 = inlined_call_operand.vmem [shape: f32[1,128], index: 2, kind: input, shape index: {}]   ;;  %s980_s3 = inlined_call_operand.hbm [shape: bf16[128,128], index: 3, kind: input, shape index: {}]   ;;  %s981_s4 = inlined_call_operand.vmem [shape: f32[1,128], index: 4, kind: input, shape index: {}]   ;;  %s982_s5 = inlined_call_operand.vmem [shape: f32[16,128], index: 5, kind: output, shape index: {}]  }
   0x1   :  { %11 = vsyncpa [#allocation5], 0  ;;  %s885_s18 = smov 0   ;;  %s887_s19 = smov 0  }
   0x2   :  { %s889_s20 = smov 0  }
   0x3 LB: > { %s611_s21 = sadd.s32 4294967295, %s847_s20   ;;  %s29_s22 = sadd.s32 1, %s843_s19  ;;  %s847_s20 = sphi %s889_s20, %s17_s20   ;;  %s843_s19 = sphi %s887_s19, %s987_s19   ;;  %s839_s18 = sphi %s885_s18, %s986_s18  }
   0x4   : > { %p31_p0 = scmp.ge.s32.totalorder %s29_s22, 2  ;;  %p613_p1 = scmp.ge.s32.totalorder %s847_s20, 1 }
   0x5   : > { %p180_p2 = scmp.lt.s32.totalorder %s847_s20, 3  ;;  %p910_p4 = scmp.eq.s32.totalorder %s611_s21, 0 }
   0x6   : > { %s989_s22 = smov (%p31_p0, %s29_s22), 0  ;;  %s849_s25 = smov [#allocation2]  }
   0x7   : > { %p906_p3 = pnand %p613_p1, %p180_p2  ;;  %s194_s26 = sshll.u32 %s849_s25, 4  ;;  %s195_s26 = int_to_ptr.vmem [resolvable:$true] %s194_s26 }
   0x8   : > { %s850_s28 = smov [#allocation4]   ;;  %s776_s30 = scalar_lea.vmem %s195_s26, 1024 }
   0x9   : > { %p708_p5 = pneg %p906_p3  ;;  %s213_s29 = sshll.u32 %s850_s28, 4  ;;  %s214_s29 = int_to_ptr.vmem [resolvable:$true] %s213_s29 }
   0xa   : > { %p777_p8 = scmp.ne.s32.totalorder %s195_s26, %s776_s30  ;;  %p784_p11 = scmp.lt.s32.totalorder %s195_s26, %s195_s26 }
   0xb   : > { %p918_p6 = pnand %p910_p4, %p708_p5  ;;  %p785_p12 = scmp.lt.s32.totalorder %s776_s30, %s776_s30 }
   0xd   : > { %p767_p7 = pneg %p918_p6  ;;  %p786_p13 = por %p785_p12, %p784_p11 }
   0xf   : > { %p779_p9 = pnand %p777_p8, %p767_p7 }
  0x11   : > { %p780_p10 = pneg %p779_p9 }
  0x13   : > { %p787_p0 = pnand %p786_p13, %p780_p10 }
  0x15   : > { %790 = shalt.err (!%p787_p0)
}
  0x16   : > { %s851_s6 = smov 64   ;;  %s852_s7 = smov 4  }
  0x17   : > { %711 = dma.hbm_to_vmem [thread:$0]  (!%p918_p6), %s978_s1, 1024, %s195_s26, [#allocation3], %s851_s6, %s851_s6, %s852_s7  }
  0x18   : > { %s802_s10 = scalar_lea.vmem %s214_s29, 1024  ;;  %p810_p8 = scmp.lt.s32.totalorder %s214_s29, %s214_s29 }
  0x19   : > { %p803_p1 = scmp.ne.s32.totalorder %s214_s29, %s802_s10  ;;  %p811_p9 = scmp.lt.s32.totalorder %s802_s10, %s802_s10 }
  0x1b   : > { %p805_p2 = pnand %p803_p1, %p767_p7  ;;  %p812_p11 = por %p811_p9, %p810_p8 }
  0x1d   : > { %p806_p5 = pneg %p805_p2 }
  0x1f   : > { %p813_p10 = pnand %p812_p11, %p806_p5 }
  0x21   : > { %816 = shalt.err (!%p813_p10)
}
  0x22   : > { %714 = dma.hbm_to_vmem [thread:$0]  (!%p918_p6), %s980_s3, 1024, %s214_s29, [#allocation5], %s851_s6, %s851_s6, %s852_s7  }
  0x23   : > { %239 = sbr.rel (%p906_p3) target bundleno = 475 (0x1db), region = 40 }
  0x28   : > { %830 = dma.done.wait (%p910_p4), [#allocation3], 1024  }
  0x29   : > { %832 = vsyncadd (%p910_p4), [#allocation3], 4294966272 }
  0x2a   : > { %834 = dma.done.wait (%p910_p4), [#allocation5], 1024  }
  0x2b   : > { %836 = vsyncadd (%p910_p4), [#allocation5], 4294966272  ;;  %v853_v0 = vmov 0.0   ;;  %vm854_vm0 = vmmov 0   ;;  %v749_v1 = vld [vmem:[#allocation2 + $0x38] sm:$0xff]   ;;  %v750_v2 = vld [vmem:[#allocation2 + $0x30] sm:$0xff]  }
  0x2c   : > { %660 = vmatprep.subr.bf16.mxu0 %v853_v0  ;;  %676 = vmatprep.mubr.msk.bf16.mxu0 %vm854_vm0, %v853_v0  ;;  %v751_v3 = vld [vmem:[#allocation2 + $0x28] sm:$0xff]   ;;  %v757_v4 = vld [vmem:[#allocation4 + $0x38] sm:$0xff]   ;;  %v752_v5 = vld [vmem:[#allocation2 + $0x20] sm:$0xff]   ;;  %p269_p3 = scmp.lt.s32.totalorder %s839_s18, 1 }
  0x2d   : > { %680 = vmatprep.subr.bf16.mxu1 %v853_v0  ;;  %696 = vmatprep.mubr.msk.bf16.mxu1 %vm854_vm0, %v853_v0  ;;  %v758_v6 = vld [vmem:[#allocation4 + $0x30] sm:$0xff]   ;;  %v753_v7 = vld [vmem:[#allocation2 + $0x18] sm:$0xff]   ;;  %v759_v8 = vld [vmem:[#allocation4 + $0x28] sm:$0xff]  }
  0x2e   : > { %661 = vmatpush3.bf16.msra.mxu0 %v749_v1  ;;  %681 = vmatpush3.bf16.msra.mxu1 %v757_v4  ;;  %v754_v9 = vld [vmem:[#allocation2 + $0x10] sm:$0xff]   ;;  %v760_v10 = vld [vmem:[#allocation4 + $0x20] sm:$0xff]   ;;  %s991_s18 = smov (!%p269_p3, %s839_s18), 1  ;;  %v755_v11 = vld [vmem:[#allocation2 + $0x8] sm:$0xff]  }
  0x2f   : > { %662 = vmatprep.subr.bf16.mxu0 %v853_v0  ;;  %682 = vmatprep.subr.bf16.mxu1 %v853_v0  ;;  %v761_v12 = vld [vmem:[#allocation4 + $0x18] sm:$0xff]   ;;  %s620_s13 = sshll.u32 %s991_s18, 2  ;;  %v756_v13 = vld [vmem:[#allocation2] sm:$0xff]   ;;  %v762_v14 = vld [vmem:[#allocation4 + $0x10] sm:$0xff]   ;;  %s621_s23 = sshll.u32 %s991_s18, 3 }
  0x30   : > { %s272_s16 = scalar_lea.vmem %s977_s0, %s620_s13  ;;  %v763_v16 = vld [vmem:[#allocation4 + $0x8] sm:$0xff]   ;;  %v764_v17 = vld [vmem:[#allocation4] sm:$0xff]   ;;  %s277_s28 = scalar_lea.vmem %s982_s5, %s621_s23 }
  0x31   : > { %v284_v15 = vld [vmem:[%s272_s16] sm:$0xf] }
  0x32   : > { %663 = vmatpush3.bf16.msra.mxu0 %v750_v2  ;;  %683 = vmatpush3.bf16.msra.mxu1 %v758_v6  ;;  %v622_v18 = vld [vmem:[%s979_s2] ss:$0 sm:$0xff] }
  0x33   : > { %664 = vmatprep.subr.bf16.mxu0 %v853_v0  ;;  %684 = vmatprep.subr.bf16.mxu1 %v853_v0  ;;  %v639_v27 = vld [vmem:[%s981_s4] ss:$0 sm:$0xff] }
  0x36   : > { %665 = vmatpush3.bf16.msra.mxu0 %v751_v3  ;;  %685 = vmatpush3.bf16.msra.mxu1 %v759_v8 }
  0x37   : > { %666 = vmatprep.subr.bf16.mxu0 %v853_v0  ;;  %686 = vmatprep.subr.bf16.mxu1 %v853_v0 }
  0x3a   : > { %667 = vmatpush3.bf16.msra.mxu0 %v752_v5  ;;  %687 = vmatpush3.bf16.msra.mxu1 %v760_v10 }
  0x3b   : > { %668 = vmatprep.subr.bf16.mxu0 %v853_v0  ;;  %688 = vmatprep.subr.bf16.mxu1 %v853_v0 }
  0x3e   : > { %669 = vmatpush3.bf16.msra.mxu0 %v753_v7  ;;  %689 = vmatpush3.bf16.msra.mxu1 %v761_v12 }
  0x3f   : > { %670 = vmatprep.subr.bf16.mxu0 %v853_v0  ;;  %690 = vmatprep.subr.bf16.mxu1 %v853_v0 }
  0x42   : > { %671 = vmatpush3.bf16.msra.mxu0 %v754_v9  ;;  %691 = vmatpush3.bf16.msra.mxu1 %v762_v14 }
  0x43   : > { %672 = vmatprep.subr.bf16.mxu0 %v853_v0  ;;  %692 = vmatprep.subr.bf16.mxu1 %v853_v0 }
  0x46   : > { %673 = vmatpush3.bf16.msra.mxu0 %v755_v11  ;;  %693 = vmatpush3.bf16.msra.mxu1 %v763_v16 }
  0x47   : > { %674 = vmatprep.subr.bf16.mxu0 %v853_v0  ;;  %694 = vmatprep.subr.bf16.mxu1 %v853_v0 }
  0x4a   : > { %675 = vmatpush3.bf16.msra.mxu0 %v756_v13  ;;  %695 = vmatpush3.bf16.msra.mxu1 %v764_v17 }
  0x4d   : > { %677 = vmatmul.mubr.bf16.vlgmr.msra.gmra.mxu0 %v284_v15 }
 0x10d   : > { %v394_v19 = vpop.f32.mrf.mxu0 }
 0x10e   : > { %v395_v20 = vadd.f32 %v622_v18, %v394_v19 }
 0x10f   : > { %v678_v21 = vpop.f32.mrf.mxu0 }
 0x110   : > { %v400_v22 = vmax.f32 %v395_v20, 0.0 }
 0x111   : > { %v397_v23 = vpop.f32.mrf.mxu0 }
 0x112   : > { %v402_v24 = vpack.c.bf16 %v400_v22, %v400_v22 }
 0x113   : > { %v679_v25 = vpop.f32.mrf.mxu0 }
 0x114   : > { %697 = vmatmul.mubr.bf16.vlgmr.msra.gmra.mxu1 %v402_v24 }
 0x1d4   : > { %v501_v26 = vpop.f32.mrf.mxu1 }
 0x1d5   : > { %v520_v29 = vadd.f32 %v639_v27, %v501_v26 }
 0x1d6   : > { %v698_v28 = vpop.f32.mrf.mxu1 }
 0x1d7   : > { %521 = vst [vmem:[%s277_s28] sm:$0xff] %v520_v29 }
 0x1d8   : > { %v504_v30 = vpop.f32.mrf.mxu1 }
 0x1da   : > { %v699_v31 = vpop.f32.mrf.mxu1 }
 0x1db PF: > { %s17_s20 = sadd.s32 1, %s847_s20   ;;  %s986_s18 = smov %s843_s19 }
 0x1dc   : > { %p14_p4 = scmp.ge.s32.totalorder %s17_s20, 4   ;;  %s987_s19 = smov %s989_s22 }
 0x1de   :  { %16 = sbr.rel (!%p14_p4) target bundleno = 3 (0x3), region = 90 }
 0x1e3   :  { %541 = vsyncpa [#allocation3], 1 }
 0x1e4   :  { %543 = vsyncpa [#allocation3 + $0x1], 1 }
 0x1e5   :  { %544 = vsyncpa [#allocation5], 1 }

</bundles_post_ra>
